<compile_context>
chip_gen: v7x
topology: tpu7x:2x2x1
jax: 0.10.0
libtpu: 0.0.40
codegen_flags: <defaults>
</compile_context>

<pallas_src>
import functools

import jax
import jax.numpy as jnp
from jax.experimental import pallas as pl
from jax.experimental.pallas import tpu as pltpu


def catclf_kernel(x_ref, w1_ref, w2_ref, b2_ref, out_ref):
    # hidden = sigmoid(x @ W1^T)    (Linear(784, K, bias=False) -> Sigmoid)
    h = jnp.dot(x_ref[...], w1_ref[...], preferred_element_type=jnp.float32)
    h = jax.nn.sigmoid(h)                       # stable logistic; exp on EUP
    # logits = hidden @ W2^T + b2   (Linear(K, 10) with bias), f32 accumulate
    logits = jnp.dot(h, w2_ref[...], preferred_element_type=jnp.float32)
    out_ref[...] = (logits + b2_ref[...]).astype(out_ref.dtype)


def _round_up(n: int, m: int) -> int:
    return ((n + m - 1) // m) * m


def _cdiv(a: int, b: int) -> int:
    return (a + b - 1) // b


@functools.partial(jax.jit, static_argnames=("block_b",))
def cat_classifier_forward_padded(x, w1, w2, b2, *, block_b=1024):
    """Forward pass of CatClassifier, returning a lane-dense logit slab.

    x:  [B, F]  flattened images (f32, or bf16 if it already lives in bf16)
    w1: [K, F]  PyTorch nn.Linear(F, K, bias=False).weight
    w2: [C, K]  PyTorch nn.Linear(K, C).weight
    b2: [C]     PyTorch nn.Linear(K, C).bias
    returns [B, 128] float32; columns [:C] are the logits, columns [C:] are
    exactly zero.  Keep the slab and fuse the [:, :C] slice into the consumer
    to avoid an extra HBM pass.

    block_b: nominal batch tile size.  1024 keeps 2-3 double-buffered x tiles
    plus weights under v5e's 16 MiB scoped-VMEM default; v6e/v7x can go to
    ~2048 if desired.
    """
    B, F = x.shape
    K = w1.shape[0]
    C = w2.shape[0]
    K_pad = _round_up(K, 128)      # 32  -> 128
    C_pad = _round_up(C, 128)      # 10  -> 128 (lane-dense output slab)

    # --- batch tiling -------------------------------------------------------
    num_tiles = _cdiv(B, block_b)
    if num_tiles == 1 and B >= 16:
        num_tiles = 2              # keep both v7x TensorCores fed
    TB = _round_up(_cdiv(B, num_tiles), 8)
    num_tiles = _cdiv(B, TB)       # ragged last tile handled by Pallas masking

    # --- small, VMEM-resident weights (only these get padded) --------------
    # Pre-transposed to [in, out]; padded W2 rows / b2 lanes are zero so the
    # sigmoid(0)=0.5 values in the padded hidden lanes contribute nothing.
    w_dtype = x.dtype              # follow x; no standalone cast of x itself
    w1_p = jnp.zeros((F, K_pad), w_dtype).at[:, :K].set(w1.T.astype(w_dtype))
    w2_p = jnp.zeros((K_pad, C_pad), jnp.float32).at[:K, :C].set(
        w2.astype(jnp.float32).T)
    b2_p = jnp.zeros((1, C_pad), jnp.float32).at[0, :C].set(
        b2.astype(jnp.float32))

    # --- x tile buffering ----------------------------------------------------
    if num_tiles >= 3:
        x_spec = pl.BlockSpec((TB, F), lambda i: (i, 0),
                              pipeline_mode=pl.Buffered(3))
        n_x_buf = 3
    else:
        x_spec = pl.BlockSpec((TB, F), lambda i: (i, 0))
        n_x_buf = 2

    # --- VMEM budget / cost hint --------------------------------------------
    x_item = jnp.dtype(x.dtype).itemsize
    w_bytes = F * K_pad * jnp.dtype(w_dtype).itemsize + K_pad * C_pad * 4 + C_pad * 4
    vmem_needed = (n_x_buf * TB * F * x_item      # pipelined x tiles
                   + 2 * TB * C_pad * 4           # pipelined output tiles
                   + 2 * w_bytes)                 # weight specs (default 2-buf)
    vmem_limit = min(64 << 20, int(vmem_needed) + (8 << 20))

    cost = pl.CostEstimate(
        flops=2 * num_tiles * TB * (F * K_pad + K_pad * C_pad),
        transcendentals=num_tiles * TB * K_pad,
        bytes_accessed=B * F * x_item + B * C_pad * 4 + w_bytes,
    )

    out = pl.pallas_call(
        catclf_kernel,
        out_shape=jax.ShapeDtypeStruct((B, C_pad), jnp.float32),
        grid_spec=pl.GridSpec(
            grid=(num_tiles,),
            in_specs=[
                # x: tiled along batch, streamed straight from HBM (no repad).
                x_spec,
                # Weights / bias: constant index_map -> DMA'd once, VMEM-resident.
                pl.BlockSpec((F, K_pad), lambda i: (0, 0)),
                pl.BlockSpec((K_pad, C_pad), lambda i: (0, 0)),
                pl.BlockSpec((1, C_pad), lambda i: (0, 0)),
            ],
            out_specs=pl.BlockSpec((TB, C_pad), lambda i: (i, 0)),
        ),
        compiler_params=pltpu.CompilerParams(
            # Batch tiles are independent -> shardable across TensorCores.
            dimension_semantics=("parallel",),
            vmem_limit_bytes=vmem_limit,
        ),
        cost_estimate=cost,
    )(x, w1_p, w2_p, b2_p)
    return out


def cat_classifier_forward(x, w1, w2, b2, *, block_b=1024):
    """Convenience wrapper returning the logical [B, C] logits.

    Prefer cat_classifier_forward_padded + fusing the column slice into the
    consumer; this standalone slice is an extra (small) HBM pass.
    """
    C = w2.shape[0]
    return cat_classifier_forward_padded(x, w1, w2, b2, block_b=block_b)[:, :C]


if __name__ == "__main__":
    # Shapes implied by the module: 784 input features (flattened 28x28 MNIST),
    # hidden K, 10 classes. Small batch, but enough for a multi-tile grid.
    B, F, K, C = 64, 784, 32, 10

    key = jax.random.PRNGKey(0)
    kx, kw1, kw2, kb2 = jax.random.split(key, 4)

    x = jax.random.normal(kx, (B, F), dtype=jnp.float32)
    # Deterministic synthetic parameters in PyTorch layout:
    # W1=(K,F) [bias=False], W2=(C,K), b2=(C,)
    w1 = jax.random.normal(kw1, (K, F), dtype=jnp.float32) * 0.05
    w2 = jax.random.normal(kw2, (C, K), dtype=jnp.float32) * 0.05
    b2 = jax.random.normal(kb2, (C,), dtype=jnp.float32) * 0.05

    # block_b=32 -> grid of 2 batch tiles at this toy size (exercises the
    # pipelined batch tiling; production sizes use the 1024 default).
    slab = cat_classifier_forward_padded(x, w1, w2, b2, block_b=32)
    slab = jax.block_until_ready(slab)
    logits = slab[:, :C]

    # Pure-JAX reference of the same forward pass.
    ref = jax.nn.sigmoid(x @ w1.T) @ w2.T + b2
    assert slab.shape == (B, 128)
    assert logits.shape == (B, C)
    assert jnp.allclose(logits, ref, atol=3e-5, rtol=3e-5)
    # Padded logit columns are exactly zero (zero-padded W2 cols / b2 lanes).
    assert jnp.allclose(slab[:, C:], 0.0)

    print("KERNEL_OK")
</pallas_src>

<mosaic_0001>
module attributes {stable_mosaic.version = 11 : i64} {
  func.func @catclf_kernel(%arg0: i32, %arg1: memref<32x784xf32, #tpu.memory_space<vmem>>, %arg2: memref<784x128xf32, #tpu.memory_space<vmem>>, %arg3: memref<128x128xf32, #tpu.memory_space<vmem>>, %arg4: memref<1x128xf32, #tpu.memory_space<vmem>>, %arg5: memref<32x128xf32, #tpu.memory_space<vmem>>) attributes {dimension_semantics = [#tpu.dimension_semantics<parallel>], iteration_bounds = array<i64: 2>, scalar_prefetch = 0 : i64, scratch_operands = 0 : i64, tpu.core_type = #tpu.core_type<tc>, window_params = [{transform_indices = @transform_0, window_bounds = array<i64: 32, 784>}, {pipeline_mode = #tpu.pipeline_mode<synchronous>, transform_indices = @transform_1, window_bounds = array<i64: 784, 128>}, {pipeline_mode = #tpu.pipeline_mode<synchronous>, transform_indices = @transform_2, window_bounds = array<i64: 128, 128>}, {pipeline_mode = #tpu.pipeline_mode<synchronous>, transform_indices = @transform_3, window_bounds = array<i64: 1, 128>}, {transform_indices = @transform_4, window_bounds = array<i64: 32, 128>}]} {
    %c0 = arith.constant 0 : index
    %c0_0 = arith.constant 0 : index
    %0 = vector.load %arg1[%c0, %c0_0] : memref<32x784xf32, #tpu.memory_space<vmem>>, vector<32x784xf32>
    %c0_1 = arith.constant 0 : index
    %c0_2 = arith.constant 0 : index
    %1 = vector.load %arg2[%c0_1, %c0_2] : memref<784x128xf32, #tpu.memory_space<vmem>>, vector<784x128xf32>
    %cst = arith.constant dense<0.000000e+00> : vector<32x128xf32>
    %2 = tpu.matmul %0, %1, %cst {dimension_numbers = #tpu.dot_dimension_numbers<[1], [0], [0], [1], [0, 0, 1, 1], [], []>} : vector<32x784xf32>, vector<784x128xf32>, vector<32x128xf32> -> vector<32x128xf32>
    %3 = arith.negf %2 : vector<32x128xf32>
    %4 = math.exp %3 : vector<32x128xf32>
    %cst_3 = arith.constant 1.000000e+00 : f32
    %5 = vector.broadcast %cst_3 : f32 to vector<32x128xf32>
    %6 = arith.addf %5, %4 : vector<32x128xf32>
    %7 = arith.divf %5, %6 : vector<32x128xf32>
    %c0_4 = arith.constant 0 : index
    %c0_5 = arith.constant 0 : index
    %8 = vector.load %arg3[%c0_4, %c0_5] : memref<128x128xf32, #tpu.memory_space<vmem>>, vector<128x128xf32>
    %cst_6 = arith.constant dense<0.000000e+00> : vector<32x128xf32>
    %9 = tpu.matmul %7, %8, %cst_6 {dimension_numbers = #tpu.dot_dimension_numbers<[1], [0], [0], [1], [0, 0, 1, 1], [], []>} : vector<32x128xf32>, vector<128x128xf32>, vector<32x128xf32> -> vector<32x128xf32>
    %c0_7 = arith.constant 0 : index
    %c0_8 = arith.constant 0 : index
    %10 = vector.load %arg4[%c0_7, %c0_8] : memref<1x128xf32, #tpu.memory_space<vmem>>, vector<1x128xf32>
    %11 = vector.broadcast %10 : vector<1x128xf32> to vector<32x128xf32>
    %12 = arith.addf %9, %11 : vector<32x128xf32>
    %c0_9 = arith.constant 0 : index
    %c0_10 = arith.constant 0 : index
    %13 = vector.load %arg5[%c0_9, %c0_10] : memref<32x128xf32, #tpu.memory_space<vmem>>, vector<32x128xf32>
    tpu.vector_store %arg5[%c0_9, %c0_10], %12 {strides = array<i32>} : memref<32x128xf32, #tpu.memory_space<vmem>>, vector<32x128xf32>,
    return
  }
  func.func @transform_0(%arg0: i32) -> (i32, i32) {
    %c0_i32 = arith.constant 0 : i32
    %c0_i32_0 = arith.constant 0 : i32
    return %arg0, %c0_i32 : i32, i32
  }
  func.func @transform_1(%arg0: i32) -> (i32, i32) {
    %c0_i32 = arith.constant 0 : i32
    %c0_i32_0 = arith.constant 0 : i32
    %c0_i32_1 = arith.constant 0 : i32
    return %c0_i32, %c0_i32_0 : i32, i32
  }
  func.func @transform_2(%arg0: i32) -> (i32, i32) {
    %c0_i32 = arith.constant 0 : i32
    %c0_i32_0 = arith.constant 0 : i32
    %c0_i32_1 = arith.constant 0 : i32
    return %c0_i32, %c0_i32_0 : i32, i32
  }
  func.func @transform_3(%arg0: i32) -> (i32, i32) {
    %c0_i32 = arith.constant 0 : i32
    %c0_i32_0 = arith.constant 0 : i32
    %c0_i32_1 = arith.constant 0 : i32
    return %c0_i32, %c0_i32_0 : i32, i32
  }
  func.func @transform_4(%arg0: i32) -> (i32, i32) {
    %c0_i32 = arith.constant 0 : i32
    %c0_i32_0 = arith.constant 0 : i32
    return %arg0, %c0_i32 : i32, i32
  }
}

</mosaic_0001>

<bundles_post_ra>
// kernel: cat_classifier_forward_padded.1
= control target key start
LH: loop header
LB: loop body
LE: loop exit
PB: predicated region body
PF: predicated region fallthrough
CT: control target
= control target key end

     0   :  { %9 = vsyncpa [#allocation3], 0  ;;  %s1897_s0 = inlined_call_operand.vmem [shape: f32[64,784], index: 0, kind: input, shape index: {}]   ;;  %s1898_s1 = inlined_call_operand.vmem [shape: f32[784,128], index: 1, kind: input, shape index: {}]   ;;  %s1899_s2 = inlined_call_operand.vmem [shape: f32[128,128], index: 2, kind: input, shape index: {}]   ;;  %s1900_s3 = inlined_call_operand.vmem [shape: f32[1,128], index: 3, kind: input, shape index: {}]   ;;  %s1901_s4 = inlined_call_operand.hbm [shape: f32[64,128], index: 4, kind: output, shape index: {}]  }
   0x1   :  { %11 = vsyncpa [#allocation3 + $0x1], 0  ;;  %s1403_s15 = smov 0   ;;  %s1405_s16 = smov 0  }
   0x2   :  { %s1407_s17 = smov 0   ;;  %s1409_s18 = smov 0  }
   0x3 LB: > { %s1424_s19 = sadd.s32 4294967295, %s1373_s18   ;;  %s893_s20 = sadd.s32 4294967294, %s1373_s18   ;;  %s1373_s18 = sphi %s1409_s18, %s1908_s18   ;;  %s1369_s17 = sphi %s1407_s17, %s1907_s17   ;;  %s1365_s16 = sphi %s1405_s16, %s1906_s16   ;;  %s1361_s15 = sphi %s1403_s15, %s1905_s15  }
   0x4   : > { %s1428_s21 = sadd.s32 1, %s1373_s18   ;;  %s113_s22 = sadd.s32 1, %s1369_s17 }
   0x5   : > { %s110_s23 = ssub.s32 %s1373_s18, %s1428_s21  ;;  %p123_p0 = scmp.ne.s32.totalorder %s1369_s17, %s1365_s16 }
   0x6   : > { %p111_p1 = scmp.eq.s32.totalorder %s110_s23, 0  ;;  %p124_p2 = scmp.eq.s32.totalorder %s1424_s19, 1 }
   0x7   : > { %p129_p3 = scmp.ne.s32.totalorder %s1365_s16, %s1361_s15  ;;  %p130_p4 = scmp.eq.s32.totalorder %s893_s20, 1 }
   0x8   : > { %s1439_s24 = scalar_select %p111_p1, %s1369_s17, %s113_s22  }
   0x9   : > { %p1441_p5 = por %p124_p2, %p123_p0  ;;  %p1445_p6 = por %p130_p4, %p129_p3 }
   0xa   : > { %p896_p7 = scmp.ge.s32.totalorder %s1373_s18, 1  ;;  %p167_p8 = scmp.lt.s32.totalorder %s1373_s18, 3 }
   0xc   : > { %p168_p9 = pnand %p896_p7, %p167_p8 }
   0xd   : > { %v246_v0 = vld [vmem:[%s1898_s1 + $0x80] sm:$0xff] (!%p168_p9)  ;;  %v247_v1 = vld [vmem:[%s1898_s1 + $0x88] sm:$0xff] (!%p168_p9)  ;;  %v248_v11 = vld [vmem:[%s1898_s1 + $0x90] sm:$0xff] (!%p168_p9)  ;;  %s898_s8 = sshll.u32 (!%p168_p9), %s1424_s19, 2  ;;  %vm328_vm0 = vcmask (!%p168_p9), 130048   ;;  %s191_s7 = sand.u32 (!%p168_p9), 1, %s1365_s16  }
   0xe   : > { %171 = sbr.rel (%p168_p9) target bundleno = 568 (0x238), region = 36  ;;  %v278_v2 = vld [vmem:[%s1898_s1 + $0x180] sm:$0xff] (!%p168_p9)  ;;  %v1121_v3 = vpack.c.bf16 (!%p168_p9), %v247_v1, %v246_v0  ;;  %v279_v4 = vld [vmem:[%s1898_s1 + $0x188] sm:$0xff] (!%p168_p9)  ;;  %v249_v13 = vld [vmem:[%s1898_s1 + $0x98] sm:$0xff] (!%p168_p9)  ;;  %p1517_p10 = scmp.lt.s32.totalorder (!%p168_p9), %s898_s8, 7 }
   0xf   : > { %v230_v5 = vld [vmem:[%s1898_s1] sm:$0xff] (!%p168_p9)  ;;  %v231_v6 = vld [vmem:[%s1898_s1 + $0x8] sm:$0xff] (!%p168_p9)  ;;  %v1153_v7 = vpack.c.bf16 (!%p168_p9), %v279_v4, %v278_v2  ;;  %v280_v14 = vld [vmem:[%s1898_s1 + $0x190] sm:$0xff] (!%p168_p9)  ;;  %v1125_v16 = vpack.c.bf16 (!%p168_p9), %v249_v13, %v248_v11  ;;  %s897_s9 = sshll.u32 (!%p168_p9), %s191_s7, 5 }
  0x10   : > { %v1123_v8 = vpack.c.bf16 (!%p168_p9), %v231_v6, %v230_v5  ;;  %v262_v9 = vld [vmem:[%s1898_s1 + $0x100] sm:$0xff] (!%p168_p9)  ;;  %v263_v10 = vld [vmem:[%s1898_s1 + $0x108] sm:$0xff] (!%p168_p9)  ;;  %1122 = vmatprep.subr.bf16.mxu0 (!%p168_p9), %v1121_v3  ;;  %v281_v15 = vld [vmem:[%s1898_s1 + $0x198] sm:$0xff] (!%p168_p9)  ;;  %s193_s13 = scalar_lea.vmem (!%p168_p9), [#allocation2], %s897_s9 }
  0x11   : > { %v1155_v12 = vpack.c.bf16 (!%p168_p9), %v263_v10, %v262_v9  ;;  %1154 = vmatprep.subr.bf16.mxu1 (!%p168_p9), %v1153_v7  ;;  %v1157_v17 = vpack.c.bf16 (!%p168_p9), %v281_v15, %v280_v14  ;;  %v232_v18 = vld [vmem:[%s1898_s1 + $0x10] sm:$0xff] (!%p168_p9)  ;;  %v233_v19 = vld [vmem:[%s1898_s1 + $0x18] sm:$0xff] (!%p168_p9)  ;;  %v250_v23 = vld [vmem:[%s1898_s1 + $0xa0] sm:$0xff] (!%p168_p9)  ;;  %s831_s14 = sshll.u32 (!%p168_p9), %s193_s13, 4  ;;  %s1849_s14 = int_to_ptr.vmem [resolvable:$true] %s831_s14 }
  0x12   : > { %1124 = vmatpush3.bf16.msra.mxu0 (!%p168_p9), %v1123_v8  ;;  %v264_v20 = vld [vmem:[%s1898_s1 + $0x110] sm:$0xff] (!%p168_p9)  ;;  %v1127_v21 = vpack.c.bf16 (!%p168_p9), %v233_v19, %v232_v18  ;;  %v265_v22 = vld [vmem:[%s1898_s1 + $0x118] sm:$0xff] (!%p168_p9)  ;;  %v251_v24 = vld [vmem:[%s1898_s1 + $0xa8] sm:$0xff] (!%p168_p9) }
  0x13   : > { %1156 = vmatpush3.bf16.msra.mxu1 (!%p168_p9), %v1155_v12  ;;  %1126 = vmatprep.subr.bf16.mxu0 (!%p168_p9), %v1125_v16  ;;  %v1159_v25 = vpack.c.bf16 (!%p168_p9), %v265_v22, %v264_v20  ;;  %v1129_v26 = vpack.c.bf16 (!%p168_p9), %v251_v24, %v250_v23  ;;  %v282_v27 = vld [vmem:[%s1898_s1 + $0x1a0] sm:$0xff] (!%p168_p9)  ;;  %v283_v28 = vld [vmem:[%s1898_s1 + $0x1a8] sm:$0xff] (!%p168_p9)  ;;  %v252_v35 = vld [vmem:[%s1898_s1 + $0xb0] sm:$0xff] (!%p168_p9) }
  0x14   : > { %1158 = vmatprep.subr.bf16.mxu1 (!%p168_p9), %v1157_v17  ;;  %v234_v29 = vld [vmem:[%s1898_s1 + $0x20] sm:$0xff] (!%p168_p9)  ;;  %v1161_v30 = vpack.c.bf16 (!%p168_p9), %v283_v28, %v282_v27  ;;  %v235_v31 = vld [vmem:[%s1898_s1 + $0x28] sm:$0xff] (!%p168_p9)  ;;  %v253_v36 = vld [vmem:[%s1898_s1 + $0xb8] sm:$0xff] (!%p168_p9) }
  0x15   : > { %v266_v32 = vld [vmem:[%s1898_s1 + $0x120] sm:$0xff]  ;;  %v267_v33 = vld [vmem:[%s1898_s1 + $0x128] sm:$0xff]  ;;  %v1131_v34 = vpack.c.bf16 %v235_v31, %v234_v29  ;;  %v284_v37 = vld [vmem:[%s1898_s1 + $0x1b0] sm:$0xff]  ;;  %v1133_v39 = vpack.c.bf16 %v253_v36, %v252_v35  ;;  %s1910_s8 = smov (!%p1517_p10, %s898_s8), 7 }
  0x16   : > { %1128 = vmatpush3.bf16.msra.mxu0 %v1127_v21  ;;  %v1163_v38 = vpack.c.bf16 %v267_v33, %v266_v32  ;;  %v285_v40 = vld [vmem:[%s1898_s1 + $0x1b8] sm:$0xff]  ;;  %v236_v41 = vld [vmem:[%s1898_s1 + $0x30] sm:$0xff]  ;;  %v254_v46 = vld [vmem:[%s1898_s1 + $0xc0] sm:$0xff]  ;;  %s1253_s6 = smul.u32 56, %s1910_s8  ;;  %s914_s8 = sshll.u32 %s1424_s19, 9 }
  0x17   : > { %1160 = vmatpush3.bf16.msra.mxu1 %v1159_v25  ;;  %1130 = vmatprep.subr.bf16.mxu0 %v1129_v26  ;;  %v237_v42 = vld [vmem:[%s1898_s1 + $0x38] sm:$0xff]  ;;  %v1165_v43 = vpack.c.bf16 %v285_v40, %v284_v37  ;;  %v268_v44 = vld [vmem:[%s1898_s1 + $0x130] sm:$0xff]  ;;  %v255_v47 = vld [vmem:[%s1898_s1 + $0xc8] sm:$0xff]  ;;  %s1854_s23 = scalar_lea.hbm %s1901_s4, %s914_s8  ;;  %s1375_s19 = smov [#allocation2]  }
  0x18   : > { %1162 = vmatprep.subr.bf16.mxu1 %v1161_v30  ;;  %v269_v45 = vld [vmem:[%s1898_s1 + $0x138] sm:$0xff]  ;;  %v286_v48 = vld [vmem:[%s1898_s1 + $0x1c0] sm:$0xff]  ;;  %v287_v49 = vld [vmem:[%s1898_s1 + $0x1c8] sm:$0xff]  ;;  %v1135_v50 = vpack.c.bf16 %v237_v42, %v236_v41  ;;  %v1137_v52 = vpack.c.bf16 %v255_v47, %v254_v46  ;;  %s1618_s10 = scalar_lea.vmem %s1897_s0, %s1253_s6  ;;  %s1311_s6 = scalar_lea.vmem %s1849_s14, 512 }
  0x19   : > { %v1167_v51 = vpack.c.bf16 %v269_v45, %v268_v44  ;;  %v238_v53 = vld [vmem:[%s1898_s1 + $0x40] sm:$0xff]  ;;  %v239_v54 = vld [vmem:[%s1898_s1 + $0x48] sm:$0xff]  ;;  %v1169_v56 = vpack.c.bf16 %v287_v49, %v286_v48  ;;  %v256_v58 = vld [vmem:[%s1898_s1 + $0xd0] sm:$0xff]  ;;  %p1312_p11 = scmp.ne.s32.totalorder %s1849_s14, %s1311_s6  ;;  %s1315_s27 = sshll.u32 %s1375_s19, 4  ;;  %s1316_s27 = int_to_ptr.vmem [resolvable:$false] %s1315_s27 }
  0x1a   : > { %1132 = vmatpush3.bf16.msra.mxu0 %v1131_v34  ;;  %v270_v55 = vld [vmem:[%s1898_s1 + $0x140] sm:$0xff]  ;;  %v271_v57 = vld [vmem:[%s1898_s1 + $0x148] sm:$0xff]  ;;  %v257_v59 = vld [vmem:[%s1898_s1 + $0xd8] sm:$0xff]  ;;  %v1139_v62 = vpack.c.bf16 %v239_v54, %v238_v53  ;;  %s1317_s28 = scalar_lea.vmem %s1316_s27, 1024  ;;  %p1318_p0 = scmp.lt.s32.totalorder %s1849_s14, %s1316_s27 }
  0x1b   : > { %1164 = vmatpush3.bf16.msra.mxu1 %v1163_v38  ;;  %1134 = vmatprep.subr.bf16.mxu0 %v1133_v39  ;;  %v288_v60 = vld [vmem:[%s1898_s1 + $0x1d0] sm:$0xff]  ;;  %v289_v61 = vld [vmem:[%s1898_s1 + $0x1d8] sm:$0xff]  ;;  %v1171_v63 = vpack.c.bf16 %v271_v57, %v270_v55  ;;  %v1141_v0 = vpack.c.bf16 %v257_v59, %v256_v58  ;;  %v258_v6 = vld [vmem:[%s1898_s1 + $0xe0] sm:$0xff]  ;;  %p1313_p12 = pnand %p1312_p11, %p1441_p5  ;;  %p1319_p1 = scmp.lt.s32.totalorder %s1317_s28, %s1311_s6 }
  0x1c   : > { %1166 = vmatprep.subr.bf16.mxu1 %v1165_v43  ;;  %v240_v1 = vld [vmem:[%s1898_s1 + $0x50] sm:$0xff]  ;;  %v241_v2 = vld [vmem:[%s1898_s1 + $0x58] sm:$0xff]  ;;  %v1173_v4 = vpack.c.bf16 %v289_v61, %v288_v60  ;;  %v259_v7 = vld [vmem:[%s1898_s1 + $0xe8] sm:$0xff] }
  0x1d   : > { %v272_v3 = vld [vmem:[%s1898_s1 + $0x150] sm:$0xff]  ;;  %v273_v5 = vld [vmem:[%s1898_s1 + $0x158] sm:$0xff]  ;;  %v290_v8 = vld [vmem:[%s1898_s1 + $0x1e0] sm:$0xff]  ;;  %v1143_v10 = vpack.c.bf16 %v241_v2, %v240_v1  ;;  %v1145_v14 = vpack.c.bf16 %v259_v7, %v258_v6  ;;  %p1314_p13 = pneg %p1313_p12  ;;  %p1320_p2 = por %p1319_p1, %p1318_p0 }
  0x1e   : > { %1136 = vmatpush3.bf16.msra.mxu0 %v1135_v50  ;;  %v291_v9 = vld [vmem:[%s1898_s1 + $0x1e8] sm:$0xff]  ;;  %v242_v11 = vld [vmem:[%s1898_s1 + $0x60] sm:$0xff]  ;;  %v1175_v13 = vpack.c.bf16 %v273_v5, %v272_v3  ;;  %v205_v17 = vld [vmem:[%s1618_s10 + $0x18] sm:$0xff] }
  0x1f   : > { %1168 = vmatpush3.bf16.msra.mxu1 %v1167_v51  ;;  %1138 = vmatprep.subr.bf16.mxu0 %v1137_v52  ;;  %v243_v12 = vld [vmem:[%s1898_s1 + $0x68] sm:$0xff]  ;;  %v274_v15 = vld [vmem:[%s1898_s1 + $0x160] sm:$0xff]  ;;  %v1177_v18 = vpack.c.bf16 %v291_v9, %v290_v8  ;;  %v260_v20 = vld [vmem:[%s1898_s1 + $0xf0] sm:$0xff]  ;;  %p1321_p3 = pnand %p1320_p2, %p1314_p13 }
  0x20   : > { %1170 = vmatprep.subr.bf16.mxu1 %v1169_v56  ;;  %v203_v16 = vld [vmem:[%s1618_s10 + $0x8] sm:$0xff]  ;;  %v261_v21 = vld [vmem:[%s1898_s1 + $0xf8] sm:$0xff]  ;;  %v292_v22 = vld [vmem:[%s1898_s1 + $0x1f0] sm:$0xff]  ;;  %490 = vmatprep.mubr.f32.mxu1 %v205_v17  ;;  %v1147_v24 = vpack.c.bf16 %v243_v12, %v242_v11 }
  0x21   : > { %v275_v19 = vld [vmem:[%s1898_s1 + $0x168] sm:$0xff]  ;;  %405 = vmatprep.mubr.f32.mxu0 %v203_v16  ;;  %v293_v23 = vld [vmem:[%s1898_s1 + $0x1f8] sm:$0xff]  ;;  %v1149_v26 = vpack.c.bf16 %v261_v21, %v260_v20  ;;  %v244_v27 = vld [vmem:[%s1898_s1 + $0x70] sm:$0xff] }
  0x22   : > { %1140 = vmatpush3.bf16.msra.mxu0 %v1139_v62  ;;  %v1179_v25 = vpack.c.bf16 %v275_v19, %v274_v15  ;;  %v245_v28 = vld [vmem:[%s1898_s1 + $0x78] sm:$0xff]  ;;  %v276_v29 = vld [vmem:[%s1898_s1 + $0x170] sm:$0xff]  ;;  %v1181_v30 = vpack.c.bf16 %v293_v23, %v292_v22  ;;  %v310_v32 = vld [vmem:[%s1898_s1 + $0x280] sm:$0xff] }
  0x23   : > { %1172 = vmatpush3.bf16.msra.mxu1 %v1171_v63  ;;  %1142 = vmatprep.subr.bf16.mxu0 %v1141_v0  ;;  %v277_v31 = vld [vmem:[%s1898_s1 + $0x178] sm:$0xff]  ;;  %v311_v33 = vld [vmem:[%s1898_s1 + $0x288] sm:$0xff]  ;;  %v1151_v34 = vpack.c.bf16 %v245_v28, %v244_v27  ;;  %v294_v37 = vld [vmem:[%s1898_s1 + $0x200] sm:$0xff] }
  0x24   : > { %1174 = vmatprep.subr.bf16.mxu1 %v1173_v4  ;;  %v1183_v35 = vpack.c.bf16 %v277_v31, %v276_v29  ;;  %v1185_v36 = vpack.c.bf16 %v311_v33, %v310_v32  ;;  %v295_v38 = vld [vmem:[%s1898_s1 + $0x208] sm:$0xff]  ;;  %v312_v39 = vld [vmem:[%s1898_s1 + $0x290] sm:$0xff]  ;;  %v313_v40 = vld [vmem:[%s1898_s1 + $0x298] sm:$0xff] }
  0x25   : > { %v202_v41 = vld [vmem:[%s1618_s10] sm:$0xff]  ;;  %v1187_v42 = vpack.c.bf16 %v295_v38, %v294_v37  ;;  %v204_v43 = vld [vmem:[%s1618_s10 + $0x10] sm:$0xff]  ;;  %v1189_v44 = vpack.c.bf16 %v313_v40, %v312_v39  ;;  %v297_v46 = vld [vmem:[%s1898_s1 + $0x218] sm:$0xff] }
  0x26   : > { %1144 = vmatpush3.bf16.msra.mxu0 %v1143_v10  ;;  %v296_v45 = vld [vmem:[%s1898_s1 + $0x210] sm:$0xff]  ;;  %v314_v47 = vld [vmem:[%s1898_s1 + $0x2a0] sm:$0xff]  ;;  %v315_v48 = vld [vmem:[%s1898_s1 + $0x2a8] sm:$0xff] }
  0x27   : > { %1176 = vmatpush3.bf16.msra.mxu1 %v1175_v13  ;;  %1146 = vmatprep.subr.bf16.mxu0 %v1145_v14  ;;  %v210_v49 = vld [vmem:[%s1618_s10 + $0x40] sm:$0xff]  ;;  %v212_v50 = vld [vmem:[%s1618_s10 + $0x50] sm:$0xff]  ;;  %v327_v52 = vld [vmem:[%s1898_s1 + $0x308] sm:$0xff]  ;;  %v1191_v53 = vpack.c.bf16 %v297_v46, %v296_v45  ;;  %v1193_v56 = vpack.c.bf16 %v315_v48, %v314_v47 }
  0x28   : > { %1178 = vmatprep.subr.bf16.mxu1 %v1177_v18  ;;  %v326_v51 = vld [vmem:[%s1898_s1 + $0x300] sm:$0xff]  ;;  %v209_v54 = vld [vmem:[%s1618_s10 + $0x38] sm:$0xff]  ;;  %v299_v58 = vld [vmem:[%s1898_s1 + $0x228] sm:$0xff] }
  0x29   : > { %v1217_v55 = vpack.c.bf16 %v327_v52, %v326_v51  ;;  %v298_v57 = vld [vmem:[%s1898_s1 + $0x220] sm:$0xff]  ;;  %v211_v59 = vld [vmem:[%s1618_s10 + $0x48] sm:$0xff]  ;;  %v316_v60 = vld [vmem:[%s1898_s1 + $0x2b0] sm:$0xff] }
  0x2a   : > { %1148 = vmatpush3.bf16.msra.mxu0 %v1147_v24  ;;  %v317_v61 = vld [vmem:[%s1898_s1 + $0x2b8] sm:$0xff]  ;;  %v219_v63 = vld [vmem:[%s1618_s10 + $0x88] sm:$0xff]  ;;  %v1195_v0 = vpack.c.bf16 %v299_v58, %v298_v57  ;;  %v216_v1 = vld [vmem:[%s1618_s10 + $0x70] sm:$0xff] }
  0x2b   : > { %1180 = vmatpush3.bf16.msra.mxu1 %v1179_v25  ;;  %1150 = vmatprep.subr.bf16.mxu0 %v1149_v26  ;;  %v217_v62 = vld [vmem:[%s1618_s10 + $0x78] sm:$0xff]  ;;  %v1197_v2 = vpack.c.bf16 %v317_v61, %v316_v60  ;;  %v300_v3 = vld [vmem:[%s1898_s1 + $0x230] sm:$0xff]  ;;  %v218_v5 = vld [vmem:[%s1618_s10 + $0x80] sm:$0xff] }
  0x2c   : > { %1182 = vmatprep.subr.bf16.mxu1 %v1181_v30  ;;  %v301_v4 = vld [vmem:[%s1898_s1 + $0x238] sm:$0xff]  ;;  %v318_v6 = vld [vmem:[%s1898_s1 + $0x2c0] sm:$0xff]  ;;  %v319_v7 = vld [vmem:[%s1898_s1 + $0x2c8] sm:$0xff] }
  0x2d   : > { %v224_v8 = vld [vmem:[%s1618_s10 + $0xb0] sm:$0xff]  ;;  %v226_v9 = vld [vmem:[%s1618_s10 + $0xc0] sm:$0xff]  ;;  %v1199_v10 = vpack.c.bf16 %v301_v4, %v300_v3  ;;  %v223_v11 = vld [vmem:[%s1618_s10 + $0xa8] sm:$0xff]  ;;  %v1201_v12 = vpack.c.bf16 %v319_v7, %v318_v6 }
  0x2e   : > { %1152 = vmatpush3.bf16.msra.mxu0 %v1151_v34  ;;  %v302_v13 = vld [vmem:[%s1898_s1 + $0x240] sm:$0xff]  ;;  %v303_v14 = vld [vmem:[%s1898_s1 + $0x248] sm:$0xff]  ;;  %v225_v15 = vld [vmem:[%s1618_s10 + $0xb8] sm:$0xff] }
  0x2f   : > { %1184 = vmatpush3.bf16.msra.mxu1 %v1183_v35  ;;  %1186 = vmatprep.subr.bf16.mxu0 %v1185_v36  ;;  %v320_v16 = vld [vmem:[%s1898_s1 + $0x2d0] sm:$0xff]  ;;  %v321_v17 = vld [vmem:[%s1898_s1 + $0x2d8] sm:$0xff]  ;;  %v207_v18 = vld [vmem:[%s1618_s10 + $0x28] sm:$0xff]  ;;  %v1203_v20 = vpack.c.bf16 %v303_v14, %v302_v13 }
  0x30   : > { %1218 = vmatprep.subr.bf16.mxu1 %v1217_v55  ;;  %v208_v19 = vld [vmem:[%s1618_s10 + $0x30] sm:$0xff]  ;;  %v1205_v21 = vpack.c.bf16 %v321_v17, %v320_v16  ;;  %v305_v23 = vld [vmem:[%s1898_s1 + $0x258] sm:$0xff]  ;;  %v215_v24 = vld [vmem:[%s1618_s10 + $0x68] sm:$0xff] }
  0x31   : > { %406 = vmatmul.mubr.f32.vlgmr.msra.gmra.mrb[0].mxu0 %v202_v41  ;;  %v304_v22 = vld [vmem:[%s1898_s1 + $0x250] sm:$0xff]  ;;  %v322_v25 = vld [vmem:[%s1898_s1 + $0x2e0] sm:$0xff]  ;;  %v323_v26 = vld [vmem:[%s1898_s1 + $0x2e8] sm:$0xff] }
  0x32   : > { %491 = vmatmul.mubr.f32.vlgmr.msra.gmra.mrb[0].mxu1 %v204_v43  ;;  %1188 = vmatpush3.bf16.msra.mxu0 %v1187_v42  ;;  %v222_v27 = vld [vmem:[%s1618_s10 + $0xa0] sm:$0xff]  ;;  %v1207_v28 = vpack.c.bf16 %v305_v23, %v304_v22  ;;  %v1209_v29 = vpack.c.bf16 %v323_v26, %v322_v25  ;;  %v307_v31 = vld [vmem:[%s1898_s1 + $0x268] sm:$0xff]  ;;  %v229_v32 = vld [vmem:[%s1618_s10 + $0xd8] sm:$0xff] }
  0x33   : > { %1190 = vmatprep.subr.bf16.mxu0 %v1189_v44  ;;  %410 = vmatprep.mubr.f32.mxu0 %v210_v49  ;;  %v306_v30 = vld [vmem:[%s1898_s1 + $0x260] sm:$0xff]  ;;  %v324_v33 = vld [vmem:[%s1898_s1 + $0x2f0] sm:$0xff]  ;;  %v325_v34 = vld [vmem:[%s1898_s1 + $0x2f8] sm:$0xff] }
  0x34   : > { %495 = vmatprep.mubr.f32.mxu1 %v212_v50  ;;  %1220 = vmatpush3.bf16.msra.mxu1 %v1217_v55  ;;  %v1211_v35 = vpack.c.bf16 %v307_v31, %v306_v30  ;;  %v1213_v36 = vpack.c.bf16 %v325_v34, %v324_v33  ;;  %v308_v37 = vld [vmem:[%s1898_s1 + $0x270] sm:$0xff]  ;;  %v309_v38 = vld [vmem:[%s1898_s1 + $0x278] sm:$0xff]  ;;  %v206_v40 = vld [vmem:[%s1618_s10 + $0x20] sm:$0xff] }
  0x35   : > { %411 = vmatmul.mubr.f32.gmra.mrb[2].mxu0 %v209_v54  ;;  %v1215_v39 = vpack.c.bf16 %v309_v38, %v308_v37  ;;  %v214_v41 = vld [vmem:[%s1618_s10 + $0x60] sm:$0xff]  ;;  %v213_v42 = vld [vmem:[%s1618_s10 + $0x58] sm:$0xff]  ;;  %v220_v44 = vld [vmem:[%s1618_s10 + $0x90] sm:$0xff] }
  0x36   : > { %1192 = vmatpush3.bf16.msra.mxu0 %v1191_v53  ;;  %496 = vmatmul.mubr.f32.gmra.mrb[2].mxu1 %v211_v59  ;;  %v221_v43 = vld [vmem:[%s1618_s10 + $0x98] sm:$0xff]  ;;  %v228_v45 = vld [vmem:[%s1618_s10 + $0xd0] sm:$0xff]  ;;  %v227_v46 = vld [vmem:[%s1618_s10 + $0xc8] sm:$0xff]  ;;  %s1856_s10 = scalar_lea.sflag [#allocation3], %s191_s7 }
  0x37   : > { %1194 = vmatprep.subr.bf16.mxu0 %v1193_v56  ;;  %415 = vmatprep.mubr.f32.mxu0 %v217_v62  ;;  %v705_v47 = vld [vmem:[%s1899_s2] sm:$0xff]  ;;  %v706_v48 = vld [vmem:[%s1899_s2 + $0x8] sm:$0xff]  ;;  %v707_v50 = vld [vmem:[%s1899_s2 + $0x10] sm:$0xff] }
  0x38   : > { %500 = vmatprep.mubr.f32.mxu1 %v219_v63  ;;  %v1221_v49 = vpack.c.bf16 %v706_v48, %v705_v47  ;;  %v708_v51 = vld [vmem:[%s1899_s2 + $0x18] sm:$0xff]  ;;  %v709_v53 = vld [vmem:[%s1899_s2 + $0x20] sm:$0xff]  ;;  %v710_v54 = vld [vmem:[%s1899_s2 + $0x28] sm:$0xff] }
  0x39   : > { %416 = vmatmul.mubr.f32.gmra.mrb[4].mxu0 %v216_v1  ;;  %v1225_v52 = vpack.c.bf16 %v708_v51, %v707_v50  ;;  %v1229_v55 = vpack.c.bf16 %v710_v54, %v709_v53  ;;  %v711_v56 = vld [vmem:[%s1899_s2 + $0x30] sm:$0xff]  ;;  %v712_v57 = vld [vmem:[%s1899_s2 + $0x38] sm:$0xff]  ;;  %v713_v59 = vld [vmem:[%s1899_s2 + $0x40] sm:$0xff] }
  0x3a   : > { %1196 = vmatpush3.bf16.msra.mxu0 %v1195_v0  ;;  %501 = vmatmul.mubr.f32.gmra.mrb[4].mxu1 %v218_v5  ;;  %v1233_v58 = vpack.c.bf16 %v712_v57, %v711_v56  ;;  %v714_v60 = vld [vmem:[%s1899_s2 + $0x48] sm:$0xff]  ;;  %v715_v62 = vld [vmem:[%s1899_s2 + $0x50] sm:$0xff]  ;;  %v716_v63 = vld [vmem:[%s1899_s2 + $0x58] sm:$0xff] }
  0x3b   : > { %1198 = vmatprep.subr.bf16.mxu0 %v1197_v2  ;;  %420 = vmatprep.mubr.f32.mxu0 %v224_v8  ;;  %v1237_v61 = vpack.c.bf16 %v714_v60, %v713_v59  ;;  %v1241_v0 = vpack.c.bf16 %v716_v63, %v715_v62  ;;  %v717_v1 = vld [vmem:[%s1899_s2 + $0x60] sm:$0xff]  ;;  %v718_v2 = vld [vmem:[%s1899_s2 + $0x68] sm:$0xff]  ;;  %v719_v4 = vld [vmem:[%s1899_s2 + $0x70] sm:$0xff] }
  0x3c   : > { %505 = vmatprep.mubr.f32.mxu1 %v226_v9  ;;  %1222 = vmatprep.subr.bf16.mxu1 %v1221_v49  ;;  %v1245_v3 = vpack.c.bf16 %v718_v2, %v717_v1  ;;  %v720_v5 = vld [vmem:[%s1899_s2 + $0x78] sm:$0xff] }
  0x3d   : > { %421 = vmatmul.mubr.f32.gmra.mrb[6].mxu0 %v223_v11  ;;  %v1249_v6 = vpack.c.bf16 %v720_v5, %v719_v4 }
  0x3e   : > { %1200 = vmatpush3.bf16.msra.mxu0 %v1199_v10  ;;  %506 = vmatmul.mubr.f32.gmra.mrb[6].mxu1 %v225_v15 }
  0x3f   : > { %1202 = vmatprep.subr.bf16.mxu0 %v1201_v12  ;;  %575 = vmatprep.mubr.f32.mxu0 %v207_v18 }
  0x40   : > { %1077 = vmatprep.mubr.msk.f32.mxu1 %vm328_vm0, %v208_v19 }
  0x42   : > { %1204 = vmatpush3.bf16.msra.mxu0 %v1203_v20  ;;  %1078 = vmatmul.mubr.msk.f32.vlgmr.msra.gmra.mrb[8].mxu1 %vm328_vm0, %v215_v24 }
  0x43   : > { %1206 = vmatprep.subr.bf16.mxu0 %v1205_v21  ;;  %1080 = vmatprep.mubr.msk.f32.mxu1 %vm328_vm0, %v222_v27 }
  0x44   : > { %1224 = vmatpush3.bf16.msra.mxu1 %v1221_v49 }
  0x45   : > { %1226 = vmatprep.subr.bf16.mxu1 %v1225_v52 }
  0x46   : > { %1208 = vmatpush3.bf16.msra.mxu0 %v1207_v28  ;;  %1081 = vmatmul.mubr.msk.f32.gmra.mrb[10].mxu1 %vm328_vm0, %v229_v32 }
  0x47   : > { %1210 = vmatprep.subr.bf16.mxu0 %v1209_v29 }
  0x48   : > { %1228 = vmatpush3.bf16.msra.mxu1 %v1225_v52 }
  0x49   : > { %1230 = vmatprep.subr.bf16.mxu1 %v1229_v55 }
  0x4a   : > { %1212 = vmatpush3.bf16.msra.mxu0 %v1211_v35 }
  0x4b   : > { %1214 = vmatprep.subr.bf16.mxu0 %v1213_v36 }
  0x4c   : > { %1232 = vmatpush3.bf16.msra.mxu1 %v1229_v55 }
  0x4d   : > { %1234 = vmatprep.subr.bf16.mxu1 %v1233_v58 }
  0x4e   : > { %1216 = vmatpush3.bf16.msra.mxu0 %v1215_v39 }
  0x50   : > { %1236 = vmatpush3.bf16.msra.mxu1 %v1233_v58 }
  0x51   : > { %576 = vmatmul.mubr.f32.vlgmr.msra.gmra.mrb[8].mxu0 %v206_v40  ;;  %1238 = vmatprep.subr.bf16.mxu1 %v1237_v61 }
  0x52   : > { %580 = vmatprep.mubr.f32.mxu0 %v214_v41 }
  0x54   : > { %1240 = vmatpush3.bf16.msra.mxu1 %v1237_v61 }
  0x55   : > { %581 = vmatmul.mubr.f32.gmra.mrb[10].mxu0 %v213_v42  ;;  %1242 = vmatprep.subr.bf16.mxu1 %v1241_v0 }
  0x56   : > { %585 = vmatprep.mubr.f32.mxu0 %v221_v43 }
  0x58   : > { %1244 = vmatpush3.bf16.msra.mxu1 %v1241_v0 }
  0x59   : > { %586 = vmatmul.mubr.f32.gmra.mrb[12].mxu0 %v220_v44  ;;  %1246 = vmatprep.subr.bf16.mxu1 %v1245_v3 }
  0x5a   : > { %590 = vmatprep.mubr.f32.mxu0 %v228_v45 }
  0x5c   : > { %1248 = vmatpush3.bf16.msra.mxu1 %v1245_v3 }
  0x5d   : > { %591 = vmatmul.mubr.f32.gmra.mrb[14].mxu0 %v227_v46  ;;  %1250 = vmatprep.subr.bf16.mxu1 %v1249_v6 }
  0x60   : > { %1252 = vmatpush3.bf16.msra.mxu1 %v1249_v6 }
 0x104   : > { %v947_v7 = vpop.f32.mrb[0].mxu0 }
 0x105   : > { %v991_v8 = vpop.f32.mrb[0].mxu1  ;;  %v948_v9 = vpop.f32.mrb[1].mxu0 }
 0x106   : > { %v949_v10 = vadd.f32 %v948_v9, %v947_v7  ;;  %v992_v11 = vpop.f32.mrb[1].mxu1 }
 0x107   : > { %v993_v12 = vadd.f32 %v992_v11, %v991_v8  ;;  %v908_v11 = vld [vmem:[%s1900_s3] ss:$0 sm:$0xff] }
 0x108   : > { %v950_v13 = vpop.f32.mrb[2].mxu0 }
 0x109   : > { %v493_v14 = vadd.f32 %v993_v12, %v949_v10  ;;  %v994_v15 = vpop.f32.mrb[2].mxu1  ;;  %v951_v16 = vpop.f32.mrb[3].mxu0 }
 0x10a   : > { %v952_v17 = vadd.f32 %v951_v16, %v950_v13  ;;  %v995_v18 = vpop.f32.mrb[3].mxu1 }
 0x10b   : > { %v996_v19 = vadd.f32 %v995_v18, %v994_v15 }
 0x10c   : > { %v953_v20 = vpop.f32.mrb[4].mxu0 }
 0x10d   : > { %v498_v21 = vadd.f32 %v996_v19, %v952_v17  ;;  %v997_v22 = vpop.f32.mrb[4].mxu1  ;;  %v954_v23 = vpop.f32.mrb[5].mxu0 }
 0x10e   : > { %v955_v24 = vadd.f32 %v954_v23, %v953_v20  ;;  %v998_v25 = vpop.f32.mrb[5].mxu1 }
 0x10f   : > { %v999_v26 = vadd.f32 %v998_v25, %v997_v22 }
 0x110   : > { %v956_v27 = vpop.f32.mrb[6].mxu0 }
 0x111   : > { %v503_v28 = vadd.f32 %v999_v26, %v955_v24  ;;  %v1000_v29 = vpop.f32.mrb[6].mxu1  ;;  %v957_v30 = vpop.f32.mrb[7].mxu0 }
 0x112   : > { %v958_v31 = vadd.f32 %v957_v30, %v956_v27  ;;  %v1001_v32 = vpop.f32.mrb[7].mxu1 }
 0x113   : > { %v1002_v33 = vadd.f32 %v1001_v32, %v1000_v29 }
 0x115   : > { %v508_v34 = vadd.f32 %v1002_v33, %v958_v31  ;;  %v1079_v35 = vpop.f32.mrb[8].mxu1 }
 0x116   : > { %v662_v36 = vpop.f32.mrb[9].mxu1 }
 0x119   : > { %v1082_v37 = vpop.f32.mrb[10].mxu1 }
 0x11a   : > { %v672_v38 = vpop.f32.mrb[11].mxu1 }
 0x124   : > { %v1035_v39 = vpop.f32.mrb[8].mxu0 }
 0x125   : > { %v1036_v40 = vpop.f32.mrb[9].mxu0 }
 0x126   : > { %v1037_v41 = vadd.f32 %v1036_v40, %v1035_v39 }
 0x128   : > { %v1038_v42 = vpop.f32.mrb[10].mxu0  ;;  %v578_v43 = vadd.f32 %v1037_v41, %v493_v14 }
 0x129   : > { %v1039_v44 = vpop.f32.mrb[11].mxu0 }
 0x12a   : > { %v1040_v45 = vadd.f32 %v1039_v44, %v1038_v42  ;;  %v663_v46 = vadd.f32 %v662_v36, %v578_v43 }
 0x12c   : > { %v583_v47 = vadd.f32 %v1040_v45, %v498_v21  ;;  %v904_v48 = vmul.f32 -1.442695, %v663_v46  ;;  %v1041_v49 = vpop.f32.mrb[12].mxu0 }
 0x12d   : > { %v1042_v50 = vpop.f32.mrb[13].mxu0 }
 0x12e   : > { %v668_v51 = vadd.f32 %v1079_v35, %v583_v47  ;;  %1295 = vpow2.f32 %v904_v48  ;;  %v1043_v52 = vadd.f32 %v1042_v50, %v1041_v49 }
 0x130   : > { %v905_v53 = vmul.f32 -1.442695, %v668_v51  ;;  %v1044_v54 = vpop.f32.mrb[14].mxu0  ;;  %v588_v55 = vadd.f32 %v1043_v52, %v503_v28 }
 0x131   : > { %v1045_v56 = vpop.f32.mrb[15].mxu0 }
 0x132   : > { %1297 = vpow2.f32 %v905_v53  ;;  %v1046_v57 = vadd.f32 %v1045_v56, %v1044_v54  ;;  %v673_v58 = vadd.f32 %v672_v38, %v588_v55 }
 0x134   : > { %v593_v59 = vadd.f32 %v1046_v57, %v508_v34  ;;  %v906_v60 = vmul.f32 -1.442695, %v673_v58 }
 0x136   : > { %v678_v61 = vadd.f32 %v1082_v37, %v593_v59  ;;  %1299 = vpow2.f32 %v906_v60 }
 0x138   : > { %v1296_v62 = vpop.eup %1295  ;;  %v907_v63 = vmul.f32 -1.442695, %v678_v61 }
 0x139   : > { %v693_v0 = vadd.f32 1.0, %v1296_v62 }
 0x13a   : > { %1301 = vpow2.f32 %v907_v63 }
 0x13b   : > { %1303 = vrcp.f32 %v693_v0 }
 0x13c   : > { %v1298_v1 = vpop.eup %1297 }
 0x13d   : > { %v694_v2 = vadd.f32 1.0, %v1298_v1 }
 0x13f   : > { %1305 = vrcp.f32 %v694_v2 }
 0x140   : > { %v1300_v3 = vpop.eup %1299 }
 0x141   : > { %v695_v4 = vadd.f32 1.0, %v1300_v3 }
 0x143   : > { %1307 = vrcp.f32 %v695_v4 }
 0x144   : > { %v1302_v5 = vpop.eup %1301 }
 0x145   : > { %v1304_v6 = vpop.eup %1303  ;;  %v696_v7 = vadd.f32 1.0, %v1302_v5 }
 0x146   : > { %1115 = vmatprep.mubr.f32.mxu1 %v1304_v6 }
 0x147   : > { %1309 = vrcp.f32 %v696_v7 }
 0x149   : > { %v1306_v8 = vpop.eup %1305 }
 0x14a   : > { %1116 = vmatmul.mubr.f32.vlgmr.msra.gmra.mrb[12].mxu1 %v1306_v8 }
 0x14d   : > { %v1308_v9 = vpop.eup %1307 }
 0x14e   : > { %1118 = vmatprep.mubr.f32.mxu1 %v1308_v9 }
 0x151   : > { %v1310_v10 = vpop.eup %1309 }
 0x152   : > { %1119 = vmatmul.mubr.f32.gmra.mrb[14].mxu1 %v1310_v10 }
 0x21d   : > { %v1117_v12 = vpop.f32.mrb[12].mxu1 }
 0x21e   : > { %v800_v13 = vadd.f32 %v1117_v12, %v908_v11  ;;  %v794_v14 = vpop.f32.mrb[13].mxu1 }
 0x21f   : > { %v795_v15 = vadd.f32 %v908_v11, %v794_v14 }
 0x220   : > { %814 = vst [vmem:[%s193_s13 + $0x8] sm:$0xff] %v800_v13 }
 0x221   : > { %813 = vst [vmem:[%s193_s13] sm:$0xff] %v795_v15 }
 0x225   : > { %v1120_v16 = vpop.f32.mrb[14].mxu1 }
 0x226   : > { %v810_v17 = vadd.f32 %v1120_v16, %v908_v11  ;;  %v804_v18 = vpop.f32.mrb[15].mxu1 }
 0x227   : > { %v805_v19 = vadd.f32 %v908_v11, %v804_v18 }
 0x228   : > { %816 = vst [vmem:[%s193_s13 + $0x18] sm:$0xff] %v810_v17 }
 0x229   : > { %815 = vst [vmem:[%s193_s13 + $0x10] sm:$0xff] %v805_v19 }
 0x22a   : > { %1324 = shalt.err (!%p1321_p3)
}
 0x22b   : > { %s1325_s29 = scalar_lea.hbm %s1854_s23, 512  ;;  %s1329_s7 = scalar_lea.hbm %s1901_s4, 1024 }
 0x22c   : > { %p1326_p4 = scmp.ne.s32.totalorder %s1854_s23, %s1325_s29  ;;  %p1330_p9 = scmp.lt.u32.totalorder %s1854_s23, %s1901_s4 }
 0x22d   : > { %p1331_p10 = scmp.lt.u32.totalorder %s1329_s7, %s1325_s29  ;;  %p1333_p12 = scmp.lt.u32.totalorder %s1325_s29, %s1854_s23 }
 0x22e   : > { %p1327_p7 = pnand %p1326_p4, %p1441_p5 }
 0x22f   : > { %p1332_p11 = por %p1331_p10, %p1330_p9 }
 0x230   : > { %p1328_p8 = pneg %p1327_p7 }
 0x231   : > { %p1334_p13 = por %p1333_p12, %p1332_p11 }
 0x233   : > { %p1335_p0 = pnand %p1334_p13, %p1328_p8 }
 0x235   : > { %1338 = shalt.err (!%p1335_p0)
}
 0x236   : > { %s1376_s12 = smov 128   ;;  %s1377_s13 = smov 8  }
 0x237   : > { %1254 = dma.vmem_to_hbm [thread:$0]  (%p1441_p5), %s1849_s14, 512, %s1854_s23, %s1856_s10, %s1376_s12, %s1376_s12, %s1377_s13  }
 0x238 PF: > { %p1260_p1 = scmp.ge.s32.totalorder %s1373_s18, 2  ;;  %s846_s8 = sand.u32 1, %s1361_s15  }
 0x239   : > { %s847_s20 = scalar_lea.sflag [#allocation3], %s846_s8 }
 0x23a   : > { %p1257_p2 = pnand %p1260_p1, %p1445_p6 }
 0x23c   : > { %1356 = dma.done.wait (!%p1257_p2), %s847_s20, 512  }
 0x23d   : > { %1358 = vsyncadd (!%p1257_p2), %s847_s20, 4294966784  ;;  %p14_p3 = scmp.ge.s32.totalorder %s1428_s21, 4   ;;  %s1905_s15 = smov %s1365_s16 }
 0x23e   : > { %s1906_s16 = smov %s1369_s17  ;;  %s1907_s17 = smov %s1439_s24 }
 0x23f   : > { %s1908_s18 = smov %s1428_s21  ;;  %16 = sbr.rel (!%p14_p3) target bundleno = 3 (0x3), region = 71 }
 0x246   :  { %852 = vsyncpa [#allocation3], 1 }
 0x247   :  { %854 = vsyncpa [#allocation3 + $0x1], 1 }

</bundles_post_ra>
